<compile_context>
chip_gen: v7x
topology: tpu7x:2x2x1
jax: 0.10.0
libtpu: 0.0.40
codegen_flags: <defaults>
</compile_context>

<pallas_src>
import functools

import jax
import jax.numpy as jnp
from jax.experimental import pallas as pl
from jax.experimental.pallas import tpu as pltpu


def _round_up(x, m):
    return ((x + m - 1) // m) * m


def _regressor_kernel(feat_ref, w_ref, b_ref, labels_ref,
                      logits_ref, loss_ref, *, n_rows, tile_b, inv_n):
    i = pl.program_id(0)

    # Upcast in-kernel (inputs may arrive bf16; accumulate in f32 regardless).
    feat = feat_ref[...].astype(jnp.float32)          # [TB, H]
    w_row = w_ref[...].astype(jnp.float32)            # [1, H], lane-dense
    bias = b_ref[0, 0]                                # SMEM scalar

    # Linear layer as VPU elementwise multiply + lane reduce (XLU slot);
    # an N=1 MXU matvec would waste the systolic array.
    logits = jnp.sum(feat * w_row, axis=-1, keepdims=True) + bias   # [TB, 1] f32
    logits_ref[...] = logits.astype(logits_ref.dtype)

    # Masked squared error for this batch tile (rows past the true batch size
    # belong to the padded boundary block and are excluded).
    labels = labels_ref[...].astype(jnp.float32)                    # [TB, 1]
    diff = logits - labels
    row = (jax.lax.broadcasted_iota(jnp.int32, (tile_b, 1), 0)
           + i * tile_b)
    sq = jnp.where(row < n_rows, diff * diff, 0.0)
    partial_sse = jnp.sum(sq, axis=0, keepdims=True)                # [1, 1]

    # Output-resident accumulator: same loss block across the whole grid.
    @pl.when(i == 0)
    def _():
        loss_ref[...] = jnp.zeros_like(loss_ref)

    loss_ref[...] += partial_sse

    @pl.when(i == pl.num_programs(0) - 1)
    def _():
        loss_ref[...] = loss_ref[...] * inv_n        # finalize MSE = SSE / B


def _pick_batch_tile(batch, hidden, itemsize):
    # Largest batch tile such that a double-buffered feature tile stays well
    # under the scoped VMEM budget (sized for v7x's 64 MiB physical VMEM).
    if batch < 8:
        return batch                                  # block == full dim is legal
    tb = _round_up(min(batch, 512), 8)
    while tb > 8 and 2 * tb * hidden * itemsize > (8 << 20):
        tb //= 2
    return max(8, tb)


def regressor_forward(features, weight, bias, labels):
    """features: [B, H]; weight: [1, H] (torch nn.Linear(H, 1).weight layout);
    bias: [1] (or scalar); labels: [B] (or [B, 1]).

    Returns (loss scalar, logits [B, 1]) like the PyTorch module.
    """
    B, H = features.shape
    w_row = jnp.asarray(weight, jnp.float32).reshape(1, H)      # lane-dense
    b2d = jnp.asarray(bias, jnp.float32).reshape(1, 1)
    labels2d = jnp.asarray(labels, jnp.float32).reshape(B, 1)

    tb = _pick_batch_tile(B, H, features.dtype.itemsize)
    num_tiles = -(-B // tb)

    kernel = functools.partial(_regressor_kernel, n_rows=B, tile_b=tb,
                               inv_n=1.0 / B)

    logits, loss2d = pl.pallas_call(
        kernel,
        out_shape=(
            jax.ShapeDtypeStruct((B, 1), jnp.float32),           # logits
            jax.ShapeDtypeStruct((1, 1), jnp.float32),           # loss (MSE)
        ),
        grid=(num_tiles,),
        in_specs=[
            pl.BlockSpec((tb, H), lambda i: (i, 0)),             # features (HBM dtype)
            pl.BlockSpec((1, H), lambda i: (0, 0)),              # weight, lane-dense
            pl.BlockSpec(memory_space=pltpu.MemorySpace.SMEM),   # bias scalar
            pl.BlockSpec((tb, 1), lambda i: (i, 0)),             # labels
        ],
        out_specs=(
            pl.BlockSpec((tb, 1), lambda i: (i, 0)),             # logits tile
            pl.BlockSpec((1, 1), lambda i: (0, 0)),              # loss accumulator
        ),
        compiler_params=pltpu.CompilerParams(
            # loss block is revisited across the batch axis -> "arbitrary";
            # feature-read is HBM-bound so megacore sharding wouldn't pay off.
            dimension_semantics=("arbitrary",),
        ),
    )(features, w_row, b2d, labels2d)

    return loss2d[0, 0], logits


if __name__ == "__main__":
    key = jax.random.PRNGKey(0)
    k_feat, k_w, k_lab = jax.random.split(key, 3)

    batch, hidden = 8, 32

    # Deterministic parameter init mirroring Regressor.init_weights:
    #   weight ~ N(0, 0.02) with torch layout [out_features, in_features] = [1, H]
    #   bias = 0
    weight = 0.02 * jax.random.normal(k_w, (1, hidden), dtype=jnp.float32)
    bias = jnp.zeros((1,), dtype=jnp.float32)

    features = jax.random.normal(k_feat, (batch, hidden), dtype=jnp.float32)
    labels = jax.random.normal(k_lab, (batch,), dtype=jnp.float32)

    loss, logits = jax.jit(regressor_forward)(features, weight, bias, labels)
    jax.block_until_ready((loss, logits))

    # Reference check in plain JAX (same math as the PyTorch module).
    logits_ref = features @ weight.T + bias[0]
    loss_ref = jnp.mean((logits_ref.reshape(-1) - labels.reshape(-1)) ** 2)
    assert logits.shape == (batch, 1)
    assert jnp.allclose(logits, logits_ref, atol=1e-5, rtol=1e-5)
    assert jnp.allclose(loss, loss_ref, atol=1e-5, rtol=1e-5)

    print("KERNEL_OK")
</pallas_src>

<mosaic_0001>
module attributes {stable_mosaic.version = 11 : i64} {
  func.func @_regressor_kernel(%arg0: i32, %arg1: memref<8x32xf32, #tpu.memory_space<vmem>>, %arg2: memref<1x32xf32, #tpu.memory_space<vmem>>, %arg3: memref<1x1xf32, #tpu.memory_space<smem>>, %arg4: memref<8x1xf32, #tpu.memory_space<vmem>>, %arg5: memref<8x1xf32, #tpu.memory_space<vmem>>, %arg6: memref<1x1xf32, #tpu.memory_space<vmem>>) attributes {dimension_semantics = [#tpu.dimension_semantics<arbitrary>], iteration_bounds = array<i64: 1>, scalar_prefetch = 0 : i64, scratch_operands = 0 : i64, tpu.core_type = #tpu.core_type<tc>, window_params = [{transform_indices = @transform_0, window_bounds = array<i64: 8, 32>}, {pipeline_mode = #tpu.pipeline_mode<synchronous>, transform_indices = @transform_1, window_bounds = array<i64: 1, 32>}, {transform_indices = @transform_2, window_bounds = array<i64: 1, 1>}, {transform_indices = @transform_3, window_bounds = array<i64: 8, 1>}, {transform_indices = @transform_4, window_bounds = array<i64: 8, 1>}, {pipeline_mode = #tpu.pipeline_mode<synchronous>, transform_indices = @transform_5, window_bounds = array<i64: 1, 1>}]} {
    %c0 = arith.constant 0 : index
    %c0_0 = arith.constant 0 : index
    %0 = vector.load %arg1[%c0, %c0_0] : memref<8x32xf32, #tpu.memory_space<vmem>>, vector<8x32xf32>
    %c0_1 = arith.constant 0 : index
    %c0_2 = arith.constant 0 : index
    %1 = vector.load %arg2[%c0_1, %c0_2] : memref<1x32xf32, #tpu.memory_space<vmem>>, vector<1x32xf32>
    %c0_3 = arith.constant 0 : index
    %c0_4 = arith.constant 0 : index
    %2 = memref.load %arg3[%c0_3, %c0_4] : memref<1x1xf32, #tpu.memory_space<smem>>
    %3 = vector.broadcast %1 : vector<1x32xf32> to vector<8x32xf32>
    %4 = arith.mulf %0, %3 : vector<8x32xf32>
    %cst = arith.constant dense<0.000000e+00> : vector<8xf32>
    %5 = vector.multi_reduction <add>, %4, %cst [1] : vector<8x32xf32> to vector<8xf32>
    %6 = vector.shape_cast %5 : vector<8xf32> to vector<8x1xf32>
    %7 = vector.broadcast %2 : f32 to vector<8x1xf32>
    %8 = arith.addf %6, %7 : vector<8x1xf32>
    %c0_5 = arith.constant 0 : index
    %c0_6 = arith.constant 0 : index
    %9 = vector.load %arg5[%c0_5, %c0_6] : memref<8x1xf32, #tpu.memory_space<vmem>>, vector<8x1xf32>
    tpu.vector_store %arg5[%c0_5, %c0_6], %8 {strides = array<i32>} : memref<8x1xf32, #tpu.memory_space<vmem>>, vector<8x1xf32>,
    %c0_7 = arith.constant 0 : index
    %c0_8 = arith.constant 0 : index
    %10 = vector.load %arg4[%c0_7, %c0_8] : memref<8x1xf32, #tpu.memory_space<vmem>>, vector<8x1xf32>
    %11 = arith.subf %8, %10 : vector<8x1xf32>
    %12 = tpu.iota {dimensions = array<i32: 0>} : vector<8x1xi32>
    %c8_i32 = arith.constant 8 : i32
    %13 = arith.muli %arg0, %c8_i32 : i32
    %14 = vector.broadcast %13 : i32 to vector<8x1xi32>
    %15 = arith.addi %12, %14 : vector<8x1xi32>
    %c8_i32_9 = arith.constant 8 : i32
    %16 = vector.broadcast %c8_i32_9 : i32 to vector<8x1xi32>
    %17 = arith.cmpi slt, %15, %16 : vector<8x1xi32>
    %18 = arith.mulf %11, %11 : vector<8x1xf32>
    %cst_10 = arith.constant 0.000000e+00 : f32
    %19 = vector.broadcast %cst_10 : f32 to vector<8x1xf32>
    %20 = arith.select %17, %18, %19 : vector<8x1xi1>, vector<8x1xf32>
    %cst_11 = arith.constant dense<0.000000e+00> : vector<1xf32>
    %21 = vector.multi_reduction <add>, %20, %cst_11 [0] : vector<8x1xf32> to vector<1xf32>
    %22 = vector.shape_cast %21 : vector<1xf32> to vector<1x1xf32>
    %c0_i32 = arith.constant 0 : i32
    %23 = arith.cmpi eq, %arg0, %c0_i32 : i32
    %24 = arith.extui %23 : i1 to i32
    %c0_i32_12 = arith.constant 0 : i32
    %25 = arith.cmpi ne, %24, %c0_i32_12 : i32
    scf.if %25 {
      %cst_19 = arith.constant 0.000000e+00 : f32
      %32 = vector.broadcast %cst_19 : f32 to vector<1x1xf32>
      %c0_20 = arith.constant 0 : index
      %c0_21 = arith.constant 0 : index
      %33 = vector.load %arg6[%c0_20, %c0_21] : memref<1x1xf32, #tpu.memory_space<vmem>>, vector<1x1xf32>
      tpu.vector_store %arg6[%c0_20, %c0_21], %32 {strides = array<i32>} : memref<1x1xf32, #tpu.memory_space<vmem>>, vector<1x1xf32>,
    } else {
    }
    %c0_13 = arith.constant 0 : index
    %c0_14 = arith.constant 0 : index
    %26 = vector.load %arg6[%c0_13, %c0_14] : memref<1x1xf32, #tpu.memory_space<vmem>>, vector<1x1xf32>
    %27 = arith.addf %26, %22 : vector<1x1xf32>
    %c0_15 = arith.constant 0 : index
    %c0_16 = arith.constant 0 : index
    %28 = vector.load %arg6[%c0_15, %c0_16] : memref<1x1xf32, #tpu.memory_space<vmem>>, vector<1x1xf32>
    tpu.vector_store %arg6[%c0_15, %c0_16], %27 {strides = array<i32>} : memref<1x1xf32, #tpu.memory_space<vmem>>, vector<1x1xf32>,
    %c0_i32_17 = arith.constant 0 : i32
    %29 = arith.cmpi eq, %arg0, %c0_i32_17 : i32
    %30 = arith.extui %29 : i1 to i32
    %c0_i32_18 = arith.constant 0 : i32
    %31 = arith.cmpi ne, %30, %c0_i32_18 : i32
    scf.if %31 {
      %c0_19 = arith.constant 0 : index
      %c0_20 = arith.constant 0 : index
      %32 = vector.load %arg6[%c0_19, %c0_20] : memref<1x1xf32, #tpu.memory_space<vmem>>, vector<1x1xf32>
      %cst_21 = arith.constant 1.250000e-01 : f32
      %33 = vector.broadcast %cst_21 : f32 to vector<1x1xf32>
      %34 = arith.mulf %32, %33 : vector<1x1xf32>
      %c0_22 = arith.constant 0 : index
      %c0_23 = arith.constant 0 : index
      %35 = vector.load %arg6[%c0_22, %c0_23] : memref<1x1xf32, #tpu.memory_space<vmem>>, vector<1x1xf32>
      tpu.vector_store %arg6[%c0_22, %c0_23], %34 {strides = array<i32>} : memref<1x1xf32, #tpu.memory_space<vmem>>, vector<1x1xf32>,
    } else {
    }
    return
  }
  func.func @transform_0(%arg0: i32) -> (i32, i32) {
    %c0_i32 = arith.constant 0 : i32
    %c0_i32_0 = arith.constant 0 : i32
    return %arg0, %c0_i32 : i32, i32
  }
  func.func @transform_1(%arg0: i32) -> (i32, i32) {
    %c0_i32 = arith.constant 0 : i32
    %c0_i32_0 = arith.constant 0 : i32
    %c0_i32_1 = arith.constant 0 : i32
    return %c0_i32, %c0_i32_0 : i32, i32
  }
  func.func @transform_2(%arg0: i32) -> (i32, i32) {
    %c0_i32 = arith.constant 0 : i32
    %c0_i32_0 = arith.constant 0 : i32
    %c0_i32_1 = arith.constant 0 : i32
    return %c0_i32, %c0_i32_0 : i32, i32
  }
  func.func @transform_3(%arg0: i32) -> (i32, i32) {
    %c0_i32 = arith.constant 0 : i32
    %c0_i32_0 = arith.constant 0 : i32
    return %arg0, %c0_i32 : i32, i32
  }
  func.func @transform_4(%arg0: i32) -> (i32, i32) {
    %c0_i32 = arith.constant 0 : i32
    %c0_i32_0 = arith.constant 0 : i32
    return %arg0, %c0_i32 : i32, i32
  }
  func.func @transform_5(%arg0: i32) -> (i32, i32) {
    %c0_i32 = arith.constant 0 : i32
    %c0_i32_0 = arith.constant 0 : i32
    %c0_i32_1 = arith.constant 0 : i32
    return %c0_i32, %c0_i32_0 : i32, i32
  }
}

</mosaic_0001>

<bundles_post_ra>
// kernel: regressor_forward.1
= control target key start
LH: loop header
LB: loop body
LE: loop exit
PB: predicated region body
PF: predicated region fallthrough
CT: control target
= control target key end

     0   :  { %vm31_vm0 = vcmask 261120   ;;  %s179_s0 = inlined_call_operand.vmem [shape: f32[8,32], index: 0, kind: input, shape index: {}]   ;;  %s180_s1 = inlined_call_operand.vmem [shape: f32[1,32], index: 1, kind: input, shape index: {}]   ;;  %s181_s2 = inlined_call_operand.<no memory space> [shape: f32[1,1], index: 2, kind: input, shape index: {}]   ;;  %s182_s3 = inlined_call_operand.vmem [shape: f32[8,1], index: 3, kind: input, shape index: {}]   ;;  %s183_s4 = inlined_call_operand.vmem [shape: f32[8,1], index: 4, kind: output, shape index: {0}]   ;;  %s184_s5 = inlined_call_operand.hbm [shape: f32[1,1], index: 5, kind: output, shape index: {1}]  }
   0x1   :  { %v21_v0 = vld [vmem:[%s179_s0] sm:$0xff] }
   0x2   :  { %v90_v1 = vld [vmem:[%s180_s1] ss:$0 sm:$0xff] }
   0x3   :  { %12 = vsyncpa [#allocation4], 0  ;;  %v30_v2 = vmul.f32 %v90_v1, %v21_v0  ;;  %vm60_vm1 = vcmask 0   ;;  %v117_v4 = vmov 0.0   ;;  %v35_v5 = vstv %s181_s2  ;;  %v39_v7 = vld [vmem:[%s182_s3] sm:$0xff]  ;;  %s118_s2 = smov [#allocation3]  }
   0x4   :  { %61 = vst.msk [vmem:[#allocation3] sm:$0x1] %vm60_vm1, %v117_v4  ;;  %vm37_vm2 = vcmask 7168   ;;  %s80_s3 = sshll.u32 %s118_s2, 4  ;;  %s81_s3 = int_to_ptr.vmem [resolvable:$true] %s80_s3 }
   0x5   :  { %v32_v3 = vsel %vm31_vm0, %v30_v2, 0.0  ;;  %s97_s26 = scalar_lea.vmem %s81_s3, 32  ;;  %p98_p1 = scmp.lt.s32.totalorder %s81_s3, %s81_s3 }
   0x6   :  { %33 = vadd.xlane.f32.xlu0 %v32_v3 }
   0xb   :  { %v62_v17 = vld [vmem:[#allocation3] sm:$0x1] }
  0x93   :  { %v34_v6 = vpop.xlane.xlu0 %33 }
  0x94   :  { %v36_v8 = vadd.f32 %v35_v5, %v34_v6 }
  0x96   :  { %38 = vst.msk [vmem:[%s183_s4] sm:$0xff] %vm37_vm2, %v36_v8  ;;  %v40_v9 = vsub.f32 %v36_v8, %v39_v7  ;;  %s93_s4 = scalar_lea.vmem %s81_s3, 16 }
  0x97   :  { %p94_p0 = scmp.ne.s32.totalorder %s81_s3, %s93_s4  ;;  %p99_p2 = scmp.lt.s32.totalorder %s97_s26, %s93_s4 }
  0x98   :  { %v47_v10 = vmul.f32 %v40_v9, %v40_v9 }
  0x99   :  { %p100_p3 = por %p99_p2, %p98_p1 }
  0x9a   :  { %v49_v11 = vsel %vm37_vm2, %v47_v10, 0.0 }
  0x9b   :  { %v50_v12 = vrot.slane %v49_v11, 4  ;;  %p101_p4 = pnand %p100_p3, %p94_p0 }
  0x9d   :  { %v51_v13 = vadd.f32 %v50_v12, %v49_v11 }
  0x9f   :  { %v52_v14 = vrot.slane %v51_v13, 2 }
  0xa1   :  { %v53_v15 = vadd.f32 %v52_v14, %v51_v13 }
  0xa3   :  { %v54_v16 = vrot.slane %v53_v15, 1 }
  0xa5   :  { %v55_v18 = vadd.f32 %v54_v16, %v53_v15 }
  0xa7   :  { %v63_v19 = vadd.f32 %v62_v17, %v55_v18 }
  0xa9   :  { %65 = vst.msk [vmem:[#allocation3] sm:$0x1] %vm60_vm1, %v63_v19 }
  0xb0   :  { %v69_v20 = vld [vmem:[#allocation3] sm:$0x1] }
  0xb1   :  { %v70_v21 = vmul.f32 0.125, %v69_v20 }
  0xb3   :  { %71 = vst.msk [vmem:[#allocation3] sm:$0x1] %vm60_vm1, %v70_v21 }
  0xb4   :  { %104 = shalt.err (!%p101_p4)
}
  0xb5   :  { %s105_s29 = scalar_lea.hbm %s184_s5, 16 }
  0xb6   :  { %p106_p5 = scmp.ne.s32.totalorder %s184_s5, %s105_s29  ;;  %p109_p6 = scmp.lt.u32.totalorder %s105_s29, %s184_s5 }
  0xb8   :  { %p111_p7 = pnand %p109_p6, %p106_p5 }
  0xba   :  { %114 = shalt.err (!%p111_p7)
}
  0xbb   :  { %83 = dma.vmem_to_hbm [thread:$0]  %s81_s3, 16, %s184_s5, [#allocation4]  }
  0xbc   :  { %115 = dma.done.wait [#allocation4], 16  }
  0xbd   :  { %116 = vsyncadd [#allocation4], 4294967280 }
  0xbe   :  { %89 = vsyncpa [#allocation4], 1 }

</bundles_post_ra>
